<compile_context>
chip_gen: v7x
topology: tpu7x:2x2x1
jax: 0.10.0
libtpu: 0.0.40
codegen_flags: <defaults>
</compile_context>

<pallas_src>
import functools

import jax
import jax.numpy as jnp
import numpy as np
from jax import lax
from jax.experimental import pallas as pl
from jax.experimental.pallas import tpu as pltpu

EPS = 1e-5
LANE = 128
SUBLANE = 8


def _ru(x, m):
    return (x + m - 1) // m * m


def make_layout(series_length, pred_len):
    """Static layout of the packed weight slab.  Every segment starts at a
    128-row / 128-lane multiple so all in-kernel views are tile-aligned."""
    P, L = pred_len, series_length
    H = 2 * P
    Ppad, Lpad, Hpad = _ru(P, LANE), _ru(L, LANE), _ru(H, LANE)
    Fpad, Opad = _ru(H // 2, LANE), _ru(P, LANE)
    lay = dict(Ppad=Ppad, Lpad=Lpad, Hpad=Hpad, Fpad=Fpad, Opad=Opad,
               cols=3 * Hpad)
    r = 0
    for name, nrows, c0, ncols in (
            ("w1a", Ppad, 0, Hpad),         # series branch, layer 1
            ("w1b", Hpad, 0, Hpad),         # series branch, layer 2
            ("w2a", Lpad, 0, Hpad),         # text branch, layer 1
            ("w2b", Hpad, 0, Hpad),         # text branch, layer 2
            ("wqkv_s", Hpad, 0, 3 * Hpad),  # [Q/sqrt(H) | K | V], series rows
            ("wqkv_t", Hpad, 0, 3 * Hpad),  # [Q/sqrt(H) | K | V], text rows
            ("wf1", Hpad, 0, Fpad),
            ("wf2", Fpad, 0, Opad)):
        lay[name] = (r, nrows, c0, ncols)
        r += nrows
    lay["rows"] = r
    return lay


def tts_kernel(s_ref, t_ref, w_ref, b_ref, out_ref, *, B, P, L, lay):
    Bp, Ppad = s_ref.shape
    Lpad = t_ref.shape[1]
    Hpad, Fpad, Opad = lay["Hpad"], lay["Fpad"], lay["Opad"]

    s = s_ref[...]                                   # [Bp, Ppad] f32, zero-padded
    t = t_ref[...]                                   # [Bp, Lpad]

    # Lane-validity masks: exclude pad lanes from the RevIN statistics.
    p_mask = (lax.broadcasted_iota(jnp.int32, (Bp, Ppad), 1) < P).astype(jnp.float32)
    l_mask = (lax.broadcasted_iota(jnp.int32, (Bp, Lpad), 1) < L).astype(jnp.float32)

    # --- RevIN 'norm': two-pass (centered) variance, EUP rsqrt ---
    s_mean = jnp.sum(s, axis=1, keepdims=True) * (1.0 / P)
    s_c = (s - s_mean) * p_mask
    s_var = jnp.sum(s_c * s_c, axis=1, keepdims=True) * (1.0 / P)
    s_inv = lax.rsqrt(s_var + EPS)
    s_std = (s_var + EPS) * s_inv                    # = sqrt(var + eps), no 2nd sqrt
    s_n = s_c * s_inv

    t_mean = jnp.sum(t, axis=1, keepdims=True) * (1.0 / L)
    t_c = (t - t_mean) * l_mask
    t_var = jnp.sum(t_c * t_c, axis=1, keepdims=True) * (1.0 / L)
    t_n = t_c * lax.rsqrt(t_var + EPS)

    # --- tile-aligned views of the packed slabs ---
    def wview(name):
        r, n, c0, nc = lay[name]
        return w_ref[r:r + n, c0:c0 + nc]            # bf16, 128-aligned static slice

    def bias(i, ncols):
        return b_ref[i:i + 1, 0:ncols]               # f32 bias row

    def mm(a, name):                                 # bf16 MXU operands, f32 accum
        return jnp.dot(a.astype(w_ref.dtype), wview(name),
                       preferred_element_type=jnp.float32)

    # --- branch MLPs (un-fused: no zero-block MACs, no concatenate) ---
    h1 = jnp.maximum(mm(s_n, "w1a") + bias(0, Hpad), 0.0)
    h1 = jnp.maximum(mm(h1, "w1b") + bias(1, Hpad), 0.0)
    h2 = jnp.maximum(mm(t_n, "w2a") + bias(2, Hpad), 0.0)
    h2 = jnp.maximum(mm(h2, "w2b") + bias(3, Hpad), 0.0)

    # --- fused [Q|K|V] projection; concat(h1,h2) replaced by a split-K sum ---
    qkv = mm(h1, "wqkv_s") + mm(h2, "wqkv_t") + bias(4, 3 * Hpad)   # [Bp, 3*Hpad]
    q = qkv[:, 0:Hpad]                               # 1/sqrt(H) folded into Q block
    k = qkv[:, Hpad:2 * Hpad]
    v = qkv[:, 2 * Hpad:3 * Hpad]

    # --- attention over the batch (matches the torch module for 2-D inputs);
    #     padded batch rows are masked out of the softmax.
    scores = lax.dot_general(q, k, (((1,), (1,)), ((), ())),
                             preferred_element_type=jnp.float32)    # [Bp, Bp]
    col_valid = lax.broadcasted_iota(jnp.int32, (Bp, Bp), 1) < B
    scores = jnp.where(col_valid, scores, -1e30)
    scores = scores - jnp.max(scores, axis=-1, keepdims=True)
    e = jnp.exp(scores)
    attn = e * pl.reciprocal(jnp.sum(e, axis=-1, keepdims=True), approx=True)
    ao = jnp.dot(attn, v, preferred_element_type=jnp.float32)       # [Bp, Hpad]

    # --- fusion head + RevIN 'denorm' (series stats); lane-dense (128) store ---
    f = jnp.maximum(mm(ao, "wf1") + bias(5, Fpad), 0.0)
    f = mm(f, "wf2") + bias(6, Opad)
    out_ref[...] = f * s_std + s_mean


def init_params(key, series_length, pred_len):
    """Deterministic synthetic parameters (torch.nn.Linear-style uniform init)."""
    hidden = pred_len * 2

    def linear(k, fan_in, fan_out):
        kw, kb = jax.random.split(k)
        bound = 1.0 / np.sqrt(fan_in)
        w = jax.random.uniform(kw, (fan_in, fan_out), jnp.float32, -bound, bound)
        b = jax.random.uniform(kb, (1, fan_out), jnp.float32, -bound, bound)
        return w, b

    ks = jax.random.split(key, 9)
    w1a, b1a = linear(ks[0], pred_len, hidden)
    w1b, b1b = linear(ks[1], hidden, hidden)
    w2a, b2a = linear(ks[2], series_length, hidden)
    w2b, b2b = linear(ks[3], hidden, hidden)
    wq, bq = linear(ks[4], 2 * hidden, hidden)
    wk, bk = linear(ks[5], 2 * hidden, hidden)
    wv, bv = linear(ks[6], 2 * hidden, hidden)
    wf1, bf1 = linear(ks[7], hidden, hidden // 2)
    wf2, bf2 = linear(ks[8], hidden // 2, pred_len)

    return dict(w1a=w1a, b1a=b1a, w1b=w1b, b1b=b1b,
                w2a=w2a, b2a=b2a, w2b=w2b, b2b=b2b,
                wq=wq, bq=bq, wk=wk, bk=bk, wv=wv, bv=bv,
                wf1=wf1, bf1=bf1, wf2=wf2, bf2=bf2, hidden=hidden)


def pack_params(params, series_length, pred_len, weight_dtype=jnp.bfloat16):
    """Pack weights ONCE into a 128-aligned bf16 slab + a small f32 bias slab."""
    P, L = pred_len, series_length
    H = 2 * P
    lay = make_layout(series_length, pred_len)
    Hpad = lay["Hpad"]
    scale = 1.0 / float(H) ** 0.5

    wbuf = np.zeros((lay["rows"], lay["cols"]), np.float32)

    def put(name, w):
        r, _, c0, _ = lay[name]
        w = np.asarray(w, np.float32)
        wbuf[r:r + w.shape[0], c0:c0 + w.shape[1]] = w

    put("w1a", params["w1a"])
    put("w1b", params["w1b"])
    put("w2a", params["w2a"])
    put("w2b", params["w2b"])
    put("wf1", params["wf1"])
    put("wf2", params["wf2"])

    wq = np.asarray(params["wq"], np.float32) * scale   # fold 1/sqrt(H) into Q
    wk = np.asarray(params["wk"], np.float32)
    wv = np.asarray(params["wv"], np.float32)
    for name, rows in (("wqkv_s", slice(0, H)), ("wqkv_t", slice(H, 2 * H))):
        r, _, _, _ = lay[name]
        wbuf[r:r + H, 0:H] = wq[rows]
        wbuf[r:r + H, Hpad:Hpad + H] = wk[rows]
        wbuf[r:r + H, 2 * Hpad:2 * Hpad + H] = wv[rows]

    bbuf = np.zeros((8, lay["cols"]), np.float32)
    bbuf[0, 0:H] = np.asarray(params["b1a"]).reshape(-1)
    bbuf[1, 0:H] = np.asarray(params["b1b"]).reshape(-1)
    bbuf[2, 0:H] = np.asarray(params["b2a"]).reshape(-1)
    bbuf[3, 0:H] = np.asarray(params["b2b"]).reshape(-1)
    bbuf[4, 0:H] = np.asarray(params["bq"]).reshape(-1) * scale
    bbuf[4, Hpad:Hpad + H] = np.asarray(params["bk"]).reshape(-1)
    bbuf[4, 2 * Hpad:2 * Hpad + H] = np.asarray(params["bv"]).reshape(-1)
    bbuf[5, 0:H // 2] = np.asarray(params["bf1"]).reshape(-1)
    bbuf[6, 0:P] = np.asarray(params["bf2"]).reshape(-1)

    return (jnp.asarray(wbuf).astype(weight_dtype),
            jnp.asarray(bbuf, jnp.float32), lay)


def build_tts_forward(wbuf, bbuf, lay, series_length, pred_len):
    """Returns a forward(text_pred, series_pred) closure over the packed slabs."""
    P, L = pred_len, series_length
    Ppad, Lpad, Opad = lay["Ppad"], lay["Lpad"], lay["Opad"]

    # TODO(synk): at production sizes add a grid over B (dimension_semantics=
    # ("parallel",) — mandatory on v7x for its 2 TensorCores) tiling only the query
    # rows while keeping the full K/V batch resident (attention couples the batch),
    # and set vmem_limit_bytes for the 16/32/32 MiB scoped VMEM defaults (v5e/v6e/v7x).
    @jax.jit
    def _run(text_pred, series_pred):
        B = series_pred.shape[0]
        Bp = _ru(max(B, SUBLANE), SUBLANE)
        # RevIN with C == 1 followed by [:, :, -1]: just the squeezed channel.
        s2 = series_pred[:, :, -1].astype(jnp.float32)        # [B, pred_len]
        t2 = text_pred[:, :, -1].astype(jnp.float32)          # [B, series_length]
        s_pad = jnp.pad(s2, ((0, Bp - B), (0, Ppad - P)))     # sublane + lane pad
        t_pad = jnp.pad(t2, ((0, Bp - B), (0, Lpad - L)))

        vmem = pl.BlockSpec(memory_space=pltpu.MemorySpace.VMEM)
        out = pl.pallas_call(
            functools.partial(tts_kernel, B=B, P=P, L=L, lay=lay),
            out_shape=jax.ShapeDtypeStruct((Bp, Opad), jnp.float32),
            in_specs=[vmem, vmem, vmem, vmem],
            out_specs=vmem,
        )(s_pad, t_pad, wbuf, bbuf)
        return out[:B, :P][:, :, None]                         # [B, pred_len, 1]

    def forward(text_pred, series_pred):
        return _run(text_pred, series_pred), 0                 # (outputs, 0)

    return forward


def tts_reference(text_pred, series_pred, params):
    """Pure-JAX f32 reference of the torch forward (eval mode) for verification."""
    hidden = params["hidden"]
    s = series_pred[:, :, -1].astype(jnp.float32)
    t = text_pred[:, :, -1].astype(jnp.float32)
    s_mean = jnp.mean(s, 1, keepdims=True)
    s_std = jnp.sqrt(jnp.var(s, 1, keepdims=True) + EPS)
    t_mean = jnp.mean(t, 1, keepdims=True)
    t_std = jnp.sqrt(jnp.var(t, 1, keepdims=True) + EPS)
    sn, tn = (s - s_mean) / s_std, (t - t_mean) / t_std
    h1 = jax.nn.relu(sn @ params["w1a"] + params["b1a"])
    h1 = jax.nn.relu(h1 @ params["w1b"] + params["b1b"])
    h2 = jax.nn.relu(tn @ params["w2a"] + params["b2a"])
    h2 = jax.nn.relu(h2 @ params["w2b"] + params["b2b"])
    fused = jnp.concatenate([h1, h2], axis=1)
    q = fused @ params["wq"] + params["bq"]
    k = fused @ params["wk"] + params["bk"]
    v = fused @ params["wv"] + params["bv"]
    attn = jax.nn.softmax(q @ k.T / (float(hidden) ** 0.5), axis=-1)
    ao = attn @ v
    f = jax.nn.relu(ao @ params["wf1"] + params["bf1"])
    f = f @ params["wf2"] + params["bf2"]
    return (f * s_std + s_mean)[:, :, None], 0


if __name__ == "__main__":
    B, series_length, pred_len = 4, 12, 8
    key = jax.random.PRNGKey(0)
    k_t, k_s, k_p = jax.random.split(key, 3)

    text_pred = jax.random.normal(k_t, (B, series_length, 1), jnp.float32)
    series_pred = jax.random.normal(k_s, (B, pred_len, 1), jnp.float32)
    params = init_params(k_p, series_length, pred_len)

    # Pack the parameter slabs ONCE; the jitted forward closes over them.
    wbuf, bbuf, lay = pack_params(params, series_length, pred_len)
    tts_forward = build_tts_forward(wbuf, bbuf, lay, series_length, pred_len)

    out, zero = tts_forward(text_pred, series_pred)
    out = jax.block_until_ready(out)
    out2, _ = tts_forward(text_pred, series_pred)   # cached path: no repack / retrace
    out2 = jax.block_until_ready(out2)

    ref, _ = tts_reference(text_pred, series_pred, params)
    # Tolerance covers bf16 MXU operands (f32 accumulation), the EUP approximate
    # reciprocal in the softmax denominator and the rsqrt-based std; the reference
    # is exact f32.
    np.testing.assert_allclose(np.asarray(out), np.asarray(ref), rtol=3e-2, atol=3e-2)
    np.testing.assert_allclose(np.asarray(out2), np.asarray(out), rtol=0, atol=0)
    assert out.shape == (B, pred_len, 1) and zero == 0
    print("KERNEL_OK")
</pallas_src>

<mosaic_0001>
module attributes {stable_mosaic.version = 11 : i64} {
  func.func @tts_kernel(%arg0: memref<8x128xf32, #tpu.memory_space<vmem>>, %arg1: memref<8x128xf32, #tpu.memory_space<vmem>>, %arg2: memref<1024x384xbf16, #tpu.memory_space<vmem>>, %arg3: memref<8x384xf32, #tpu.memory_space<vmem>>, %arg4: memref<8x128xf32, #tpu.memory_space<vmem>>) attributes {dimension_semantics = [], scalar_prefetch = 0 : i64, scratch_operands = 0 : i64, tpu.core_type = #tpu.core_type<tc>} {
    %c0 = arith.constant 0 : index
    %c0_0 = arith.constant 0 : index
    %0 = vector.load %arg0[%c0, %c0_0] : memref<8x128xf32, #tpu.memory_space<vmem>>, vector<8x128xf32>
    %c0_1 = arith.constant 0 : index
    %c0_2 = arith.constant 0 : index
    %1 = vector.load %arg1[%c0_1, %c0_2] : memref<8x128xf32, #tpu.memory_space<vmem>>, vector<8x128xf32>
    %2 = tpu.iota {dimensions = array<i32: 1>} : vector<8x128xi32>
    %c8_i32 = arith.constant 8 : i32
    %3 = vector.broadcast %c8_i32 : i32 to vector<8x128xi32>
    %4 = arith.cmpi slt, %2, %3 : vector<8x128xi32>
    %5 = arith.extui %4 : vector<8x128xi1> to vector<8x128xi32>
    %6 = arith.sitofp %5 : vector<8x128xi32> to vector<8x128xf32>
    %7 = tpu.iota {dimensions = array<i32: 1>} : vector<8x128xi32>
    %c12_i32 = arith.constant 12 : i32
    %8 = vector.broadcast %c12_i32 : i32 to vector<8x128xi32>
    %9 = arith.cmpi slt, %7, %8 : vector<8x128xi32>
    %10 = arith.extui %9 : vector<8x128xi1> to vector<8x128xi32>
    %11 = arith.sitofp %10 : vector<8x128xi32> to vector<8x128xf32>
    %cst = arith.constant dense<0.000000e+00> : vector<8xf32>
    %12 = vector.multi_reduction <add>, %0, %cst [1] : vector<8x128xf32> to vector<8xf32>
    %13 = vector.shape_cast %12 : vector<8xf32> to vector<8x1xf32>
    %cst_3 = arith.constant 1.250000e-01 : f32
    %14 = vector.broadcast %cst_3 : f32 to vector<8x1xf32>
    %15 = arith.mulf %13, %14 : vector<8x1xf32>
    %16 = vector.broadcast %15 : vector<8x1xf32> to vector<8x128xf32>
    %17 = arith.subf %0, %16 : vector<8x128xf32>
    %18 = arith.mulf %17, %6 : vector<8x128xf32>
    %19 = arith.mulf %18, %18 : vector<8x128xf32>
    %cst_4 = arith.constant dense<0.000000e+00> : vector<8xf32>
    %20 = vector.multi_reduction <add>, %19, %cst_4 [1] : vector<8x128xf32> to vector<8xf32>
    %21 = vector.shape_cast %20 : vector<8xf32> to vector<8x1xf32>
    %cst_5 = arith.constant 1.250000e-01 : f32
    %22 = vector.broadcast %cst_5 : f32 to vector<8x1xf32>
    %23 = arith.mulf %21, %22 : vector<8x1xf32>
    %cst_6 = arith.constant 9.99999974E-6 : f32
    %24 = vector.broadcast %cst_6 : f32 to vector<8x1xf32>
    %25 = arith.addf %23, %24 : vector<8x1xf32>
    %26 = math.rsqrt %25 : vector<8x1xf32>
    %cst_7 = arith.constant 9.99999974E-6 : f32
    %27 = vector.broadcast %cst_7 : f32 to vector<8x1xf32>
    %28 = arith.addf %23, %27 : vector<8x1xf32>
    %29 = arith.mulf %28, %26 : vector<8x1xf32>
    %30 = vector.broadcast %26 : vector<8x1xf32> to vector<8x128xf32>
    %31 = arith.mulf %18, %30 : vector<8x128xf32>
    %cst_8 = arith.constant dense<0.000000e+00> : vector<8xf32>
    %32 = vector.multi_reduction <add>, %1, %cst_8 [1] : vector<8x128xf32> to vector<8xf32>
    %33 = vector.shape_cast %32 : vector<8xf32> to vector<8x1xf32>
    %cst_9 = arith.constant 0.0833333358 : f32
    %34 = vector.broadcast %cst_9 : f32 to vector<8x1xf32>
    %35 = arith.mulf %33, %34 : vector<8x1xf32>
    %36 = vector.broadcast %35 : vector<8x1xf32> to vector<8x128xf32>
    %37 = arith.subf %1, %36 : vector<8x128xf32>
    %38 = arith.mulf %37, %11 : vector<8x128xf32>
    %39 = arith.mulf %38, %38 : vector<8x128xf32>
    %cst_10 = arith.constant dense<0.000000e+00> : vector<8xf32>
    %40 = vector.multi_reduction <add>, %39, %cst_10 [1] : vector<8x128xf32> to vector<8xf32>
    %41 = vector.shape_cast %40 : vector<8xf32> to vector<8x1xf32>
    %cst_11 = arith.constant 0.0833333358 : f32
    %42 = vector.broadcast %cst_11 : f32 to vector<8x1xf32>
    %43 = arith.mulf %41, %42 : vector<8x1xf32>
    %cst_12 = arith.constant 9.99999974E-6 : f32
    %44 = vector.broadcast %cst_12 : f32 to vector<8x1xf32>
    %45 = arith.addf %43, %44 : vector<8x1xf32>
    %46 = math.rsqrt %45 : vector<8x1xf32>
    %47 = vector.broadcast %46 : vector<8x1xf32> to vector<8x128xf32>
    %48 = arith.mulf %38, %47 : vector<8x128xf32>
    %49 = arith.truncf %31 : vector<8x128xf32> to vector<8x128xbf16>
    %c0_13 = arith.constant 0 : index
    %c0_14 = arith.constant 0 : index
    %50 = vector.load %arg2[%c0_13, %c0_14] : memref<1024x384xbf16, #tpu.memory_space<vmem>>, vector<128x128xbf16>
    %cst_15 = arith.constant dense<0.000000e+00> : vector<8x128xf32>
    %51 = tpu.matmul %49, %50, %cst_15 {dimension_numbers = #tpu.dot_dimension_numbers<[1], [0], [0], [1], [0, 0, 1, 1], [], []>} : vector<8x128xbf16>, vector<128x128xbf16>, vector<8x128xf32> -> vector<8x128xf32>
    %c0_16 = arith.constant 0 : index
    %c0_17 = arith.constant 0 : index
    %52 = vector.load %arg3[%c0_16, %c0_17] : memref<8x384xf32, #tpu.memory_space<vmem>>, vector<1x128xf32>
    %53 = vector.broadcast %52 : vector<1x128xf32> to vector<8x128xf32>
    %54 = arith.addf %51, %53 : vector<8x128xf32>
    %cst_18 = arith.constant 0.000000e+00 : f32
    %55 = vector.broadcast %cst_18 : f32 to vector<8x128xf32>
    %56 = arith.maximumf %54, %55 : vector<8x128xf32>
    %57 = arith.truncf %56 : vector<8x128xf32> to vector<8x128xbf16>
    %c128 = arith.constant 128 : index
    %c0_19 = arith.constant 0 : index
    %58 = vector.load %arg2[%c128, %c0_19] : memref<1024x384xbf16, #tpu.memory_space<vmem>>, vector<128x128xbf16>
    %cst_20 = arith.constant dense<0.000000e+00> : vector<8x128xf32>
    %59 = tpu.matmul %57, %58, %cst_20 {dimension_numbers = #tpu.dot_dimension_numbers<[1], [0], [0], [1], [0, 0, 1, 1], [], []>} : vector<8x128xbf16>, vector<128x128xbf16>, vector<8x128xf32> -> vector<8x128xf32>
    %c1 = arith.constant 1 : index
    %c0_21 = arith.constant 0 : index
    %60 = vector.load %arg3[%c1, %c0_21] : memref<8x384xf32, #tpu.memory_space<vmem>>, vector<1x128xf32>
    %61 = vector.broadcast %60 : vector<1x128xf32> to vector<8x128xf32>
    %62 = arith.addf %59, %61 : vector<8x128xf32>
    %cst_22 = arith.constant 0.000000e+00 : f32
    %63 = vector.broadcast %cst_22 : f32 to vector<8x128xf32>
    %64 = arith.maximumf %62, %63 : vector<8x128xf32>
    %65 = arith.truncf %48 : vector<8x128xf32> to vector<8x128xbf16>
    %c256 = arith.constant 256 : index
    %c0_23 = arith.constant 0 : index
    %66 = vector.load %arg2[%c256, %c0_23] : memref<1024x384xbf16, #tpu.memory_space<vmem>>, vector<128x128xbf16>
    %cst_24 = arith.constant dense<0.000000e+00> : vector<8x128xf32>
    %67 = tpu.matmul %65, %66, %cst_24 {dimension_numbers = #tpu.dot_dimension_numbers<[1], [0], [0], [1], [0, 0, 1, 1], [], []>} : vector<8x128xbf16>, vector<128x128xbf16>, vector<8x128xf32> -> vector<8x128xf32>
    %c2 = arith.constant 2 : index
    %c0_25 = arith.constant 0 : index
    %68 = vector.load %arg3[%c2, %c0_25] : memref<8x384xf32, #tpu.memory_space<vmem>>, vector<1x128xf32>
    %69 = vector.broadcast %68 : vector<1x128xf32> to vector<8x128xf32>
    %70 = arith.addf %67, %69 : vector<8x128xf32>
    %cst_26 = arith.constant 0.000000e+00 : f32
    %71 = vector.broadcast %cst_26 : f32 to vector<8x128xf32>
    %72 = arith.maximumf %70, %71 : vector<8x128xf32>
    %73 = arith.truncf %72 : vector<8x128xf32> to vector<8x128xbf16>
    %c384 = arith.constant 384 : index
    %c0_27 = arith.constant 0 : index
    %74 = vector.load %arg2[%c384, %c0_27] : memref<1024x384xbf16, #tpu.memory_space<vmem>>, vector<128x128xbf16>
    %cst_28 = arith.constant dense<0.000000e+00> : vector<8x128xf32>
    %75 = tpu.matmul %73, %74, %cst_28 {dimension_numbers = #tpu.dot_dimension_numbers<[1], [0], [0], [1], [0, 0, 1, 1], [], []>} : vector<8x128xbf16>, vector<128x128xbf16>, vector<8x128xf32> -> vector<8x128xf32>
    %c3 = arith.constant 3 : index
    %c0_29 = arith.constant 0 : index
    %76 = vector.load %arg3[%c3, %c0_29] : memref<8x384xf32, #tpu.memory_space<vmem>>, vector<1x128xf32>
    %77 = vector.broadcast %76 : vector<1x128xf32> to vector<8x128xf32>
    %78 = arith.addf %75, %77 : vector<8x128xf32>
    %cst_30 = arith.constant 0.000000e+00 : f32
    %79 = vector.broadcast %cst_30 : f32 to vector<8x128xf32>
    %80 = arith.maximumf %78, %79 : vector<8x128xf32>
    %81 = arith.truncf %64 : vector<8x128xf32> to vector<8x128xbf16>
    %c512 = arith.constant 512 : index
    %c0_31 = arith.constant 0 : index
    %82 = vector.load %arg2[%c512, %c0_31] : memref<1024x384xbf16, #tpu.memory_space<vmem>>, vector<128x384xbf16>
    %cst_32 = arith.constant dense<0.000000e+00> : vector<8x384xf32>
    %83 = tpu.matmul %81, %82, %cst_32 {dimension_numbers = #tpu.dot_dimension_numbers<[1], [0], [0], [1], [0, 0, 1, 1], [], []>} : vector<8x128xbf16>, vector<128x384xbf16>, vector<8x384xf32> -> vector<8x384xf32>
    %84 = arith.truncf %80 : vector<8x128xf32> to vector<8x128xbf16>
    %c640 = arith.constant 640 : index
    %c0_33 = arith.constant 0 : index
    %85 = vector.load %arg2[%c640, %c0_33] : memref<1024x384xbf16, #tpu.memory_space<vmem>>, vector<128x384xbf16>
    %cst_34 = arith.constant dense<0.000000e+00> : vector<8x384xf32>
    %86 = tpu.matmul %84, %85, %cst_34 {dimension_numbers = #tpu.dot_dimension_numbers<[1], [0], [0], [1], [0, 0, 1, 1], [], []>} : vector<8x128xbf16>, vector<128x384xbf16>, vector<8x384xf32> -> vector<8x384xf32>
    %87 = arith.addf %83, %86 : vector<8x384xf32>
    %c4 = arith.constant 4 : index
    %c0_35 = arith.constant 0 : index
    %88 = vector.load %arg3[%c4, %c0_35] : memref<8x384xf32, #tpu.memory_space<vmem>>, vector<1x384xf32>
    %89 = vector.broadcast %88 : vector<1x384xf32> to vector<8x384xf32>
    %90 = arith.addf %87, %89 : vector<8x384xf32>
    %91 = vector.extract_strided_slice %90 {offsets = [0, 0], sizes = [8, 128], strides = [1, 1]} : vector<8x384xf32> to vector<8x128xf32>
    %92 = vector.extract_strided_slice %90 {offsets = [0, 128], sizes = [8, 128], strides = [1, 1]} : vector<8x384xf32> to vector<8x128xf32>
    %93 = vector.extract_strided_slice %90 {offsets = [0, 256], sizes = [8, 128], strides = [1, 1]} : vector<8x384xf32> to vector<8x128xf32>
    %cst_36 = arith.constant dense<0.000000e+00> : vector<8x8xf32>
    %94 = tpu.matmul %91, %92, %cst_36 {dimension_numbers = #tpu.dot_dimension_numbers<[1], [1], [0], [0], [0, 0, 1, 0], [], []>} : vector<8x128xf32>, vector<8x128xf32>, vector<8x8xf32> -> vector<8x8xf32>
    %95 = tpu.iota {dimensions = array<i32: 1>} : vector<8x8xi32>
    %c4_i32 = arith.constant 4 : i32
    %96 = vector.broadcast %c4_i32 : i32 to vector<8x8xi32>
    %97 = arith.cmpi slt, %95, %96 : vector<8x8xi32>
    %cst_37 = arith.constant -1.000000e+30 : f32
    %98 = vector.broadcast %cst_37 : f32 to vector<8x8xf32>
    %99 = arith.select %97, %94, %98 : vector<8x8xi1>, vector<8x8xf32>
    %cst_38 = arith.constant dense<0xFF800000> : vector<8xf32>
    %100 = vector.multi_reduction <maximumf>, %99, %cst_38 [1] : vector<8x8xf32> to vector<8xf32>
    %101 = vector.shape_cast %100 : vector<8xf32> to vector<8x1xf32>
    %102 = vector.broadcast %101 : vector<8x1xf32> to vector<8x8xf32>
    %103 = arith.subf %99, %102 : vector<8x8xf32>
    %104 = math.exp %103 : vector<8x8xf32>
    %cst_39 = arith.constant dense<0.000000e+00> : vector<8xf32>
    %105 = vector.multi_reduction <add>, %104, %cst_39 [1] : vector<8x8xf32> to vector<8xf32>
    %106 = vector.shape_cast %105 : vector<8xf32> to vector<8x1xf32>
    %107 = tpu.reciprocal %106 {approx = true} : vector<8x1xf32> -> vector<8x1xf32>
    %108 = vector.broadcast %107 : vector<8x1xf32> to vector<8x8xf32>
    %109 = arith.mulf %104, %108 : vector<8x8xf32>
    %cst_40 = arith.constant dense<0.000000e+00> : vector<8x128xf32>
    %110 = tpu.matmul %109, %93, %cst_40 {dimension_numbers = #tpu.dot_dimension_numbers<[1], [0], [0], [1], [0, 0, 1, 1], [], []>} : vector<8x8xf32>, vector<8x128xf32>, vector<8x128xf32> -> vector<8x128xf32>
    %111 = arith.truncf %110 : vector<8x128xf32> to vector<8x128xbf16>
    %c768 = arith.constant 768 : index
    %c0_41 = arith.constant 0 : index
    %112 = vector.load %arg2[%c768, %c0_41] : memref<1024x384xbf16, #tpu.memory_space<vmem>>, vector<128x128xbf16>
    %cst_42 = arith.constant dense<0.000000e+00> : vector<8x128xf32>
    %113 = tpu.matmul %111, %112, %cst_42 {dimension_numbers = #tpu.dot_dimension_numbers<[1], [0], [0], [1], [0, 0, 1, 1], [], []>} : vector<8x128xbf16>, vector<128x128xbf16>, vector<8x128xf32> -> vector<8x128xf32>
    %c5 = arith.constant 5 : index
    %c0_43 = arith.constant 0 : index
    %114 = vector.load %arg3[%c5, %c0_43] : memref<8x384xf32, #tpu.memory_space<vmem>>, vector<1x128xf32>
    %115 = vector.broadcast %114 : vector<1x128xf32> to vector<8x128xf32>
    %116 = arith.addf %113, %115 : vector<8x128xf32>
    %cst_44 = arith.constant 0.000000e+00 : f32
    %117 = vector.broadcast %cst_44 : f32 to vector<8x128xf32>
    %118 = arith.maximumf %116, %117 : vector<8x128xf32>
    %119 = arith.truncf %118 : vector<8x128xf32> to vector<8x128xbf16>
    %c896 = arith.constant 896 : index
    %c0_45 = arith.constant 0 : index
    %120 = vector.load %arg2[%c896, %c0_45] : memref<1024x384xbf16, #tpu.memory_space<vmem>>, vector<128x128xbf16>
    %cst_46 = arith.constant dense<0.000000e+00> : vector<8x128xf32>
    %121 = tpu.matmul %119, %120, %cst_46 {dimension_numbers = #tpu.dot_dimension_numbers<[1], [0], [0], [1], [0, 0, 1, 1], [], []>} : vector<8x128xbf16>, vector<128x128xbf16>, vector<8x128xf32> -> vector<8x128xf32>
    %c6 = arith.constant 6 : index
    %c0_47 = arith.constant 0 : index
    %122 = vector.load %arg3[%c6, %c0_47] : memref<8x384xf32, #tpu.memory_space<vmem>>, vector<1x128xf32>
    %123 = vector.broadcast %122 : vector<1x128xf32> to vector<8x128xf32>
    %124 = arith.addf %121, %123 : vector<8x128xf32>
    %125 = vector.broadcast %29 : vector<8x1xf32> to vector<8x128xf32>
    %126 = arith.mulf %124, %125 : vector<8x128xf32>
    %127 = vector.broadcast %15 : vector<8x1xf32> to vector<8x128xf32>
    %128 = arith.addf %126, %127 : vector<8x128xf32>
    %c0_48 = arith.constant 0 : index
    %c0_49 = arith.constant 0 : index
    %129 = vector.load %arg4[%c0_48, %c0_49] : memref<8x128xf32, #tpu.memory_space<vmem>>, vector<8x128xf32>
    tpu.vector_store %arg4[%c0_48, %c0_49], %128 {strides = array<i32>} : memref<8x128xf32, #tpu.memory_space<vmem>>, vector<8x128xf32>,
    return
  }
}

</mosaic_0001>

<bundles_post_ra>
// kernel: _run.1
= control target key start
LH: loop header
LB: loop body
LE: loop exit
PB: predicated region body
PF: predicated region fallthrough
CT: control target
= control target key end

     0   :  { %v1832_v2 = vmov 0.0   ;;  %v20_v7 = vlaneseq  ;;  %vm1833_vm2 = vmmov 0   ;;  %vm1058_vm4 = vcmask 64512   ;;  %s2288_s0 = inlined_call_operand.vmem [shape: f32[8,128], index: 0, kind: input, shape index: {}]   ;;  %s2289_s1 = inlined_call_operand.vmem [shape: f32[8,128], index: 1, kind: input, shape index: {}]   ;;  %s2290_s2 = inlined_call_operand.vmem [shape: bf16[1024,384], index: 2, kind: input, shape index: {}]   ;;  %s2291_s3 = inlined_call_operand.vmem [shape: f32[8,384], index: 3, kind: input, shape index: {}]   ;;  %s2292_s4 = inlined_call_operand.vmem [shape: f32[8,128], index: 4, kind: output, shape index: {}]  }
   0x1   :  { %v18_v0 = vld [vmem:[%s2288_s0] sm:$0xff]  ;;  %1539 = vmatprep.subr.bf16.mxu0 %v1832_v2  ;;  %1559 = vmatprep.subr.bf16.mxu1 %v1832_v2  ;;  %v1714_v5 = vld [vmem:[%s2290_s2 + $0x30] ss:$12 sps:$4 sm:$0xff]   ;;  %v1715_v6 = vld [vmem:[%s2290_s2 + $0x48] ss:$12 sps:$4 sm:$0xff]  }
   0x2   :  { %28 = vadd.xlane.f32.xlu0 %v18_v0  ;;  %v19_v1 = vld [vmem:[%s2289_s1] sm:$0xff]  ;;  %v1885_v8 = vand.u32 127, %v20_v7  ;;  %v1718_v23 = vld [vmem:[%s2290_s2 + $0x90] ss:$12 sps:$4 sm:$0xff]   ;;  %v1719_v24 = vld [vmem:[%s2290_s2 + $0xa8] ss:$12 sps:$4 sm:$0xff]   ;;  %1555 = vmatprep.mubr.msk.bf16.mxu0 %vm1833_vm2, %v1832_v2 }
   0x3   :  { %v1712_v3 = vld [vmem:[%s2290_s2] ss:$12 sps:$4 sm:$0xff]   ;;  %v1713_v4 = vld [vmem:[%s2290_s2 + $0x18] ss:$12 sps:$4 sm:$0xff]   ;;  %1575 = vmatprep.mubr.msk.bf16.mxu1 %vm1833_vm2, %v1832_v2  ;;  %v1730_v27 = vld [vmem:[%s2290_s2 + $0xf0] ss:$12 sps:$4 sm:$0xff]  }
   0x4   :  { %1540 = vmatpush3.bf16.msra.mxu0 %v1712_v3  ;;  %vm22_vm0 = vcmp.lt.s32.totalorder %v1885_v8, 8  ;;  %vm25_vm1 = vcmp.lt.s32.totalorder %v1885_v8, 12  ;;  %v1716_v21 = vld [vmem:[%s2290_s2 + $0x60] ss:$12 sps:$4 sm:$0xff]   ;;  %v1717_v22 = vld [vmem:[%s2290_s2 + $0x78] ss:$12 sps:$4 sm:$0xff]  }
   0x5   :  { %1541 = vmatprep.subr.bf16.mxu0 %v1832_v2  ;;  %v1363_v11 = vsel %vm22_vm0, 1.0, %v1832_v2  ;;  %v1364_v16 = vsel %vm25_vm1, 1.0, %v1832_v2  ;;  %v1728_v25 = vld [vmem:[%s2290_s2 + $0xc0] ss:$12 sps:$4 sm:$0xff]   ;;  %v1729_v26 = vld [vmem:[%s2290_s2 + $0xd8] ss:$12 sps:$4 sm:$0xff]  }
   0x6   :  { %41 = vadd.xlane.f32.xlu0 %v19_v1  ;;  %1560 = vmatpush3.bf16.msra.mxu1 %v1728_v25  ;;  %v1731_v28 = vld [vmem:[%s2290_s2 + $0x108] ss:$12 sps:$4 sm:$0xff]   ;;  %v1732_v29 = vld [vmem:[%s2290_s2 + $0x120] ss:$12 sps:$4 sm:$0xff]   ;;  %v1733_v30 = vld [vmem:[%s2290_s2 + $0x138] ss:$12 sps:$4 sm:$0xff]  }
   0x7   :  { %1561 = vmatprep.subr.bf16.mxu1 %v1832_v2  ;;  %v1734_v31 = vld [vmem:[%s2290_s2 + $0x150] ss:$12 sps:$4 sm:$0xff]   ;;  %v1720_v38 = vld [vmem:[%s2290_s2 + $0x180] ss:$12 sps:$4 sm:$0xff]   ;;  %v1721_v40 = vld [vmem:[%s2290_s2 + $0x198] ss:$12 sps:$4 sm:$0xff]  }
   0x8   :  { %1542 = vmatpush3.bf16.msra.mxu0 %v1713_v4  ;;  %v1722_v43 = vld [vmem:[%s2290_s2 + $0x1b0] ss:$12 sps:$4 sm:$0xff]   ;;  %v1723_v45 = vld [vmem:[%s2290_s2 + $0x1c8] ss:$12 sps:$4 sm:$0xff]   ;;  %v1724_v46 = vld [vmem:[%s2290_s2 + $0x1e0] ss:$12 sps:$4 sm:$0xff]  }
   0x9   :  { %1543 = vmatprep.subr.bf16.mxu0 %v1832_v2  ;;  %v1725_v47 = vld [vmem:[%s2290_s2 + $0x1f8] ss:$12 sps:$4 sm:$0xff]   ;;  %v1726_v48 = vld [vmem:[%s2290_s2 + $0x210] ss:$12 sps:$4 sm:$0xff]   ;;  %v1727_v50 = vld [vmem:[%s2290_s2 + $0x228] ss:$12 sps:$4 sm:$0xff]  }
   0xa   :  { %1562 = vmatpush3.bf16.msra.mxu1 %v1729_v26  ;;  %v1735_v53 = vld [vmem:[%s2290_s2 + $0x168] ss:$12 sps:$4 sm:$0xff]   ;;  %v70_v54 = vld [vmem:[%s2291_s3] ss:$0 sm:$0xff]  ;;  %v1737_v63 = vld [vmem:[%s2290_s2 + $0x258] ss:$12 sps:$4 sm:$0xff]  }
   0xb   :  { %1563 = vmatprep.subr.bf16.mxu1 %v1832_v2  ;;  %v1736_v61 = vld [vmem:[%s2290_s2 + $0x240] ss:$12 sps:$4 sm:$0xff]   ;;  %v1741_v4 = vld [vmem:[%s2290_s2 + $0x2b8] ss:$12 sps:$4 sm:$0xff]   ;;  %v1752_v25 = vld [vmem:[%s2290_s2 + $0x3f0] ss:$12 sps:$4 sm:$0xff]  }
   0xc   :  { %1544 = vmatpush3.bf16.msra.mxu0 %v1714_v5  ;;  %v1740_v3 = vld [vmem:[%s2290_s2 + $0x2a0] ss:$12 sps:$4 sm:$0xff]   ;;  %v1742_v5 = vld [vmem:[%s2290_s2 + $0x2d0] ss:$12 sps:$4 sm:$0xff]   ;;  %v1755_v26 = vld [vmem:[%s2290_s2 + $0x3f8] ss:$12 sps:$4 sm:$0xff]  }
   0xd   :  { %1545 = vmatprep.subr.bf16.mxu0 %v1832_v2  ;;  %vm1056_vm3 = vcmp.lt.s32.totalorder %v1885_v8, 4  ;;  %v1809_v8 = vld [vmem:[%s2290_s2 + $0x498] ss:$12 sps:$4 sm:$0xff]  }
   0xe   :  { %1564 = vmatpush3.bf16.msra.mxu1 %v1730_v27  ;;  %v1758_v27 = vld [vmem:[%s2290_s2 + $0x40c] ss:$12 sps:$4 sm:$0xff]  }
   0xf   :  { %1565 = vmatprep.subr.bf16.mxu1 %v1832_v2 }
  0x10   :  { %1546 = vmatpush3.bf16.msra.mxu0 %v1715_v6  ;;  %v284_v6 = vld [vmem:[%s2291_s3 + $0x2] ss:$0 sm:$0xff] }
  0x11   :  { %1547 = vmatprep.subr.bf16.mxu0 %v1832_v2 }
  0x12   :  { %1566 = vmatpush3.bf16.msra.mxu1 %v1731_v28  ;;  %v1756_v28 = vld [vmem:[%s2290_s2 + $0x408] ss:$12 sps:$4 sm:$0xff]  }
  0x13   :  { %1567 = vmatprep.subr.bf16.mxu1 %v1832_v2 }
  0x14   :  { %1548 = vmatpush3.bf16.msra.mxu0 %v1716_v21  ;;  %v1750_v21 = vld [vmem:[%s2290_s2 + $0x3dc] ss:$12 sps:$4 sm:$0xff]  }
  0x15   :  { %1549 = vmatprep.subr.bf16.mxu0 %v1832_v2 }
  0x16   :  { %1568 = vmatpush3.bf16.msra.mxu1 %v1732_v29  ;;  %v1759_v29 = vld [vmem:[%s2290_s2 + $0x410] ss:$12 sps:$4 sm:$0xff]  }
  0x17   :  { %1569 = vmatprep.subr.bf16.mxu1 %v1832_v2 }
  0x18   :  { %1550 = vmatpush3.bf16.msra.mxu0 %v1717_v22  ;;  %v1748_v22 = vld [vmem:[%s2290_s2 + $0x3d8] ss:$12 sps:$4 sm:$0xff]  }
  0x19   :  { %1551 = vmatprep.subr.bf16.mxu0 %v1832_v2 }
  0x1a   :  { %1570 = vmatpush3.bf16.msra.mxu1 %v1733_v30  ;;  %v1762_v30 = vld [vmem:[%s2290_s2 + $0x424] ss:$12 sps:$4 sm:$0xff]  }
  0x1b   :  { %1571 = vmatprep.subr.bf16.mxu1 %v1832_v2 }
  0x1c   :  { %1552 = vmatpush3.bf16.msra.mxu0 %v1718_v23  ;;  %v1751_v23 = vld [vmem:[%s2290_s2 + $0x3e0] ss:$12 sps:$4 sm:$0xff]  }
  0x1d   :  { %1553 = vmatprep.subr.bf16.mxu0 %v1832_v2 }
  0x1e   :  { %1572 = vmatpush3.bf16.msra.mxu1 %v1734_v31  ;;  %v1760_v31 = vld [vmem:[%s2290_s2 + $0x420] ss:$12 sps:$4 sm:$0xff]  }
  0x1f   :  { %1573 = vmatprep.subr.bf16.mxu1 %v1832_v2 }
  0x20   :  { %1554 = vmatpush3.bf16.msra.mxu0 %v1719_v24  ;;  %v1754_v24 = vld [vmem:[%s2290_s2 + $0x3f4] ss:$12 sps:$4 sm:$0xff]  }
  0x21   :  { %1579 = vmatprep.subr.bf16.mxu0 %v1832_v2 }
  0x22   :  { %1574 = vmatpush3.bf16.msra.mxu1 %v1735_v53 }
  0x23   :  { %1599 = vmatprep.subr.bf16.mxu1 %v1832_v2 }
  0x8f   :  { %v29_v9 = vpop.xlane.xlu0 %28 }
  0x90   :  { %v1888_v10 = vmul.f32 0.125, %v29_v9 }
  0x92   :  { %v31_v12 = vsub.f32 %v18_v0, %v1888_v10  ;;  %v1738_v0 = vld [vmem:[%s2290_s2 + $0x270] ss:$12 sps:$4 sm:$0xff]  }
  0x93   :  { %v42_v13 = vpop.xlane.xlu0 %41 }
  0x94   :  { %v43_v14 = vmul.f32 0.083333336, %v42_v13  ;;  %v32_v15 = vmul.f32 %v1363_v11, %v31_v12  ;;  %v1743_v11 = vld [vmem:[%s2290_s2 + $0x2e8] ss:$12 sps:$4 sm:$0xff]  }
  0x96   :  { %v44_v17 = vsub.f32 %v19_v1, %v43_v14  ;;  %v33_v18 = vmul.f32 %v32_v15, %v32_v15  ;;  %v1739_v1 = vld [vmem:[%s2290_s2 + $0x288] ss:$12 sps:$4 sm:$0xff]  }
  0x98   :  { %34 = vadd.xlane.f32.xlu1 %v33_v18  ;;  %v1894_v19 = vmul.f32 %v1364_v16, %v44_v17  ;;  %v1746_v18 = vld [vmem:[%s2290_s2 + $0x3c4] ss:$12 sps:$4 sm:$0xff]  }
  0x9a   :  { %v46_v20 = vmul.f32 %v1894_v19, %v1894_v19 }
  0x9c   :  { %47 = vadd.xlane.f32.xlu1 %v46_v20  ;;  %v1747_v20 = vld [vmem:[%s2290_s2 + $0x3c8] ss:$12 sps:$4 sm:$0xff]  }
 0x125   :  { %v35_v32 = vpop.xlane.xlu1 %34 }
 0x126   :  { %v36_v33 = vmul.f32 0.125, %v35_v32  ;;  %v1763_v32 = vld [vmem:[%s2290_s2 + $0x428] ss:$12 sps:$4 sm:$0xff]  }
 0x128   :  { %v37_v34 = vadd.f32 1e-05, %v36_v33  ;;  %v1766_v33 = vld [vmem:[%s2290_s2 + $0x43c] ss:$12 sps:$4 sm:$0xff]  }
 0x129   :  { %v48_v41 = vpop.xlane.xlu1 %47 }
 0x12a   :  { %1824 = vrsqrt.f32 %v37_v34  ;;  %v49_v42 = vmul.f32 0.083333336, %v48_v41  ;;  %v1772_v41 = vld [vmem:[%s2290_s2 + $0x468] ss:$12 sps:$4 sm:$0xff]  }
 0x12c   :  { %v50_v44 = vadd.f32 1e-05, %v49_v42  ;;  %v1775_v42 = vld [vmem:[%s2290_s2 + $0x470] ss:$12 sps:$4 sm:$0xff]  }
 0x12e   :  { %1826 = vrsqrt.f32 %v50_v44  ;;  %v1834_v44 = vmov 0  }
 0x134   :  { %v1825_v35 = vpop.eup %1824 }
 0x135   :  { %v1946_v36 = vmul.f32 %v1825_v35, %v37_v34  ;;  %v40_v37 = vmul.f32 %v1825_v35, %v32_v15  ;;  %v1764_v34 = vld [vmem:[%s2290_s2 + $0x438] ss:$12 sps:$4 sm:$0xff]   ;;  %v1767_v35 = vld [vmem:[%s2290_s2 + $0x440] ss:$12 sps:$4 sm:$0xff]  }
 0x137   :  { %v53_v39 = vpack.c.bf16 %v40_v37, %v40_v37  ;;  %v1770_v37 = vld [vmem:[%s2290_s2 + $0x454] ss:$12 sps:$4 sm:$0xff]  }
 0x138   :  { %v1827_v49 = vpop.eup %1826 }
 0x139   :  { %1556 = vmatmul.mubr.bf16.vlgmr.msra.gmra.mrb[0].mxu0 %v53_v39  ;;  %v52_v51 = vmul.f32 %v1827_v49, %v1894_v19  ;;  %v1744_v19 = vld [vmem:[%s2290_s2 + $0x3c0] ss:$12 sps:$4 sm:$0xff]   ;;  %v1771_v39 = vld [vmem:[%s2290_s2 + $0x458] ss:$12 sps:$4 sm:$0xff]  }
 0x13a   :  { %1580 = vmatpush3.bf16.msra.mxu0 %v1720_v38  ;;  %1595 = vmatprep.mubr.msk.bf16.mxu0 %vm1833_vm2, %v1832_v2  ;;  %v1768_v38 = vld [vmem:[%s2290_s2 + $0x450] ss:$12 sps:$4 sm:$0xff]   ;;  %v391_v49 = vld [vmem:[%s2291_s3 + $0x3] ss:$0 sm:$0xff] }
 0x13b   :  { %1581 = vmatprep.subr.bf16.mxu0 %v1832_v2  ;;  %v267_v52 = vpack.c.bf16 %v52_v51, %v52_v51 }
 0x13e   :  { %1582 = vmatpush3.bf16.msra.mxu0 %v1721_v40  ;;  %v1774_v40 = vld [vmem:[%s2290_s2 + $0x46c] ss:$12 sps:$4 sm:$0xff]  }
 0x13f   :  { %1583 = vmatprep.subr.bf16.mxu0 %v1832_v2 }
 0x142   :  { %1584 = vmatpush3.bf16.msra.mxu0 %v1722_v43  ;;  %v1778_v43 = vld [vmem:[%s2290_s2 + $0x304] ss:$12 sps:$4 sm:$0xff]  }
 0x143   :  { %1585 = vmatprep.subr.bf16.mxu0 %v1832_v2 }
 0x146   :  { %1586 = vmatpush3.bf16.msra.mxu0 %v1723_v45 }
 0x147   :  { %1587 = vmatprep.subr.bf16.mxu0 %v1832_v2 }
 0x14a   :  { %1588 = vmatpush3.bf16.msra.mxu0 %v1724_v46 }
 0x14b   :  { %1589 = vmatprep.subr.bf16.mxu0 %v1832_v2 }
 0x14e   :  { %1590 = vmatpush3.bf16.msra.mxu0 %v1725_v47 }
 0x14f   :  { %1591 = vmatprep.subr.bf16.mxu0 %v1832_v2 }
 0x152   :  { %1592 = vmatpush3.bf16.msra.mxu0 %v1726_v48 }
 0x153   :  { %1593 = vmatprep.subr.bf16.mxu0 %v1832_v2 }
 0x156   :  { %1594 = vmatpush3.bf16.msra.mxu0 %v1727_v50 }
 0x157   :  { %675 = vmatprep.subr.bf16.mxu0 %v1746_v18 }
 0x159   :  { %1596 = vmatmul.mubr.bf16.vlgmr.msra.gmra.mrb[4].mxu0 %v267_v52 }
 0x15a   :  { %676 = vmatpush1.bf16.msra.mxu0 %v1744_v19  ;;  %707 = vmatprep.mubr.bf16.mxu0 %v1834_v44  ;;  %v1806_v19 = vld [vmem:[%s2290_s2 + $0x3ac] ss:$12 sps:$4 sm:$0xff]  }
 0x15b   :  { %677 = vmatprep.subr.bf16.mxu0 %v1750_v21  ;;  %v1807_v21 = vld [vmem:[%s2290_s2 + $0x3b0] ss:$12 sps:$4 sm:$0xff]  }
 0x15e   :  { %678 = vmatpush1.bf16.msra.mxu0 %v1748_v22 }
 0x15f   :  { %679 = vmatprep.subr.bf16.mxu0 %v1754_v24 }
 0x162   :  { %680 = vmatpush1.bf16.msra.mxu0 %v1752_v25 }
 0x163   :  { %681 = vmatprep.subr.bf16.mxu0 %v1758_v27 }
 0x166   :  { %682 = vmatpush1.bf16.msra.mxu0 %v1756_v28 }
 0x167   :  { %683 = vmatprep.subr.bf16.mxu0 %v1762_v30 }
 0x16a   :  { %684 = vmatpush1.bf16.msra.mxu0 %v1760_v31 }
 0x16b   :  { %685 = vmatprep.subr.bf16.mxu0 %v1766_v33 }
 0x16e   :  { %686 = vmatpush1.bf16.msra.mxu0 %v1764_v34  ;;  %v1445_v34 = vld [vmem:[%s2291_s3 + $0x4] ss:$8 sm:$0x7] }
 0x16f   :  { %687 = vmatprep.subr.bf16.mxu0 %v1770_v37 }
 0x172   :  { %688 = vmatpush1.bf16.msra.mxu0 %v1768_v38 }
 0x173   :  { %689 = vmatprep.subr.bf16.mxu0 %v1774_v40 }
 0x176   :  { %690 = vmatpush1.bf16.msra.mxu0 %v1772_v41 }
 0x177   :  { %884 = vmatprep.subr.bf16.mxu0 %v1778_v43 }
 0x20c   :  { %v153_v55 = vpop.f32.mrb[0].mxu0 }
 0x20d   :  { %v154_v56 = vadd.f32 %v153_v55, %v70_v54  ;;  %v1557_v57 = vpop.f32.mrb[1].mxu0 }
 0x20e   :  { %v156_v58 = vpop.f32.mrb[2].mxu0  ;;  %v1779_v57 = vld [vmem:[%s2290_s2 + $0x308] ss:$12 sps:$4 sm:$0xff]  }
 0x20f   :  { %v159_v59 = vmax.f32 %v154_v56, 0.0  ;;  %v1558_v60 = vpop.f32.mrb[3].mxu0  ;;  %v1776_v56 = vld [vmem:[%s2290_s2 + $0x300] ss:$12 sps:$4 sm:$0xff]  }
 0x210   :  { %v1780_v60 = vld [vmem:[%s2290_s2 + $0x318] ss:$12 sps:$4 sm:$0xff]  }
 0x211   :  { %v160_v62 = vpack.c.bf16 %v159_v59, %v159_v59  ;;  %v1782_v59 = vld [vmem:[%s2290_s2 + $0x31c] ss:$12 sps:$4 sm:$0xff]  }
 0x213   :  { %1576 = vmatmul.mubr.bf16.vlgmr.msra.gmra.mrb[0].mxu1 %v160_v62  ;;  %v1786_v62 = vld [vmem:[%s2290_s2 + $0x334] ss:$12 sps:$4 sm:$0xff]  }
 0x214   :  { %1600 = vmatpush3.bf16.msra.mxu1 %v1736_v61  ;;  %1615 = vmatprep.mubr.msk.bf16.mxu1 %vm1833_vm2, %v1832_v2  ;;  %v1783_v61 = vld [vmem:[%s2290_s2 + $0x320] ss:$12 sps:$4 sm:$0xff]  }
 0x215   :  { %1601 = vmatprep.subr.bf16.mxu1 %v1832_v2 }
 0x218   :  { %1602 = vmatpush3.bf16.msra.mxu1 %v1737_v63  ;;  %v1784_v63 = vld [vmem:[%s2290_s2 + $0x330] ss:$12 sps:$4 sm:$0xff]  }
 0x219   :  { %1603 = vmatprep.subr.bf16.mxu1 %v1832_v2 }
 0x21c   :  { %1604 = vmatpush3.bf16.msra.mxu1 %v1738_v0  ;;  %v1787_v0 = vld [vmem:[%s2290_s2 + $0x338] ss:$12 sps:$4 sm:$0xff]  }
 0x21d   :  { %1605 = vmatprep.subr.bf16.mxu1 %v1832_v2 }
 0x220   :  { %1606 = vmatpush3.bf16.msra.mxu1 %v1739_v1  ;;  %v1790_v1 = vld [vmem:[%s2290_s2 + $0x34c] ss:$12 sps:$4 sm:$0xff]  }
 0x221   :  { %1607 = vmatprep.subr.bf16.mxu1 %v1832_v2 }
 0x224   :  { %1608 = vmatpush3.bf16.msra.mxu1 %v1740_v3  ;;  %v1788_v3 = vld [vmem:[%s2290_s2 + $0x348] ss:$12 sps:$4 sm:$0xff]  }
 0x225   :  { %1609 = vmatprep.subr.bf16.mxu1 %v1832_v2 }
 0x228   :  { %1610 = vmatpush3.bf16.msra.mxu1 %v1741_v4  ;;  %v1791_v4 = vld [vmem:[%s2290_s2 + $0x350] ss:$12 sps:$4 sm:$0xff]  }
 0x229   :  { %1611 = vmatprep.subr.bf16.mxu1 %v1832_v2 }
 0x22c   :  { %v367_v9 = vpop.f32.mrb[4].mxu0  ;;  %1612 = vmatpush3.bf16.msra.mxu1 %v1742_v5  ;;  %v1794_v5 = vld [vmem:[%s2290_s2 + $0x364] ss:$12 sps:$4 sm:$0xff]  }
 0x22d   :  { %v368_v12 = vadd.f32 %v367_v9, %v284_v6  ;;  %v1597_v13 = vpop.f32.mrb[5].mxu0  ;;  %1613 = vmatprep.subr.bf16.mxu1 %v1832_v2  ;;  %v1792_v6 = vld [vmem:[%s2290_s2 + $0x360] ss:$12 sps:$4 sm:$0xff]   ;;  %v1795_v9 = vld [vmem:[%s2290_s2 + $0x368] ss:$12 sps:$4 sm:$0xff]  }
 0x22e   :  { %v370_v14 = vpop.f32.mrb[6].mxu0  ;;  %v1799_v13 = vld [vmem:[%s2290_s2 + $0x380] ss:$12 sps:$4 sm:$0xff]  }
 0x22f   :  { %v373_v15 = vmax.f32 %v368_v12, 0.0  ;;  %v1598_v16 = vpop.f32.mrb[7].mxu0  ;;  %v1796_v12 = vld [vmem:[%s2290_s2 + $0x378] ss:$12 sps:$4 sm:$0xff]   ;;  %v1802_v14 = vld [vmem:[%s2290_s2 + $0x394] ss:$12 sps:$4 sm:$0xff]  }
 0x230   :  { %1614 = vmatpush3.bf16.msra.mxu1 %v1743_v11  ;;  %v1798_v11 = vld [vmem:[%s2290_s2 + $0x37c] ss:$12 sps:$4 sm:$0xff]  }
 0x231   :  { %v374_v17 = vpack.c.bf16 %v373_v15, %v373_v15  ;;  %1619 = vmatprep.subr.bf16.mxu1 %v1832_v2  ;;  %v177_v15 = vld [vmem:[%s2291_s3 + $0x1] ss:$0 sm:$0xff]  ;;  %v1800_v16 = vld [vmem:[%s2290_s2 + $0x390] ss:$12 sps:$4 sm:$0xff]  }
 0x233   :  { %1616 = vmatmul.mubr.bf16.vlgmr.msra.gmra.mrb[4].mxu1 %v374_v17  ;;  %v1803_v17 = vld [vmem:[%s2290_s2 + $0x398] ss:$12 sps:$4 sm:$0xff]  }
 0x234   :  { %1635 = vmatprep.mubr.msk.bf16.mxu1 %vm1833_vm2, %v1832_v2  ;;  %1620 = vmatpush3.bf16.msra.mxu1 %v1747_v20  ;;  %v1804_v20 = vld [vmem:[%s2290_s2 + $0x3a8] ss:$12 sps:$4 sm:$0xff]  }
 0x235   :  { %1621 = vmatprep.subr.bf16.mxu1 %v1832_v2 }
 0x238   :  { %1622 = vmatpush3.bf16.msra.mxu1 %v1751_v23 }
 0x239   :  { %1623 = vmatprep.subr.bf16.mxu1 %v1832_v2 }
 0x23c   :  { %1624 = vmatpush3.bf16.msra.mxu1 %v1755_v26 }
 0x23d   :  { %1625 = vmatprep.subr.bf16.mxu1 %v1832_v2 }
 0x240   :  { %1626 = vmatpush3.bf16.msra.mxu1 %v1759_v29 }
 0x241   :  { %1627 = vmatprep.subr.bf16.mxu1 %v1832_v2 }
 0x244   :  { %1628 = vmatpush3.bf16.msra.mxu1 %v1763_v32  ;;  %v969_v32 = vshrl.u32 %v20_v7, 7 }
 0x245   :  { %1629 = vmatprep.subr.bf16.mxu1 %v1832_v2 }
 0x246   :  { %v978_v33 = vsub.s32 2, %v969_v32  ;;  %v970_v37 = vsub.s32 0, %v969_v32 }
 0x248   :  { %1630 = vmatpush3.bf16.msra.mxu1 %v1767_v35  ;;  %v974_v35 = vsub.s32 1, %v969_v32  ;;  %v979_v38 = vrot.slane %v1445_v34, %v978_v33 }
 0x249   :  { %1631 = vmatprep.subr.bf16.mxu1 %v1832_v2 }
 0x24a   :  { %v975_v41 = vrot.slane %v1445_v34, %v974_v35 }
 0x24c   :  { %1632 = vmatpush3.bf16.msra.mxu1 %v1771_v39 }
 0x24d   :  { %1633 = vmatprep.subr.bf16.mxu1 %v1832_v2 }
 0x250   :  { %1634 = vmatpush3.bf16.msra.mxu1 %v1775_v42 }
 0x251   :  { %1639 = vmatprep.subr.bf16.mxu1 %v1832_v2 }
 0x2e6   :  { %v260_v45 = vpop.f32.mrb[0].mxu1 }
 0x2e7   :  { %v1577_v46 = vpop.f32.mrb[1].mxu1  ;;  %v261_v18 = vadd.f32 %v260_v45, %v177_v15  ;;  %v1818_v15 = vld [vmem:[%s2290_s2 + $0x570] ss:$12 sps:$4 sm:$0xff]  }
 0x2e8   :  { %v263_v47 = vpop.f32.mrb[2].mxu1 }
 0x2e9   :  { %v1578_v48 = vpop.f32.mrb[3].mxu1  ;;  %v266_v22 = vmax.f32 %v261_v18, 0.0  ;;  %v1821_v18 = vld [vmem:[%s2290_s2 + $0x5b8] ss:$12 sps:$4 sm:$0xff]  }
 0x2eb   :  { %v481_v23 = vpack.c.bf16 %v266_v22, %v266_v22  ;;  %v1822_v22 = vld [vmem:[%s2290_s2 + $0x5d0] ss:$12 sps:$4 sm:$0xff]  }
 0x306   :  { %v474_v50 = vpop.f32.mrb[4].mxu1 }
 0x307   :  { %v475_v51 = vadd.f32 %v474_v50, %v391_v49  ;;  %v1617_v52 = vpop.f32.mrb[5].mxu1  ;;  %v971_v49 = vrot.slane %v1445_v34, %v970_v37 }
 0x308   :  { %v477_v53 = vpop.f32.mrb[6].mxu1 }
 0x309   :  { %v480_v54 = vmax.f32 %v475_v51, 0.0  ;;  %v1618_v55 = vpop.f32.mrb[7].mxu1 }
 0x30b   :  { %v514_v58 = vpack.c.bf16 %v480_v54, %v480_v54 }
 0x30d   :  { %708 = vmatmul.mubr.bf16.vlgmr.msra.gmra.mrb[8].mxu0 %v514_v58  ;;  %1636 = vmatmul.mubr.bf16.vlgmr.msra.gmra.mrb[8].mxu1 %v514_v58 }
 0x30e   :  { %885 = vmatpush1.bf16.msra.mxu0 %v1776_v56  ;;  %1640 = vmatpush3.bf16.msra.mxu1 %v1779_v57 }
 0x30f   :  { %886 = vmatprep.subr.bf16.mxu0 %v1782_v59  ;;  %1641 = vmatprep.subr.bf16.mxu1 %v1832_v2 }
 0x310   :  { %916 = vmatprep.mubr.bf16.mxu0 %v1834_v44  ;;  %1655 = vmatprep.mubr.msk.bf16.mxu1 %vm1833_vm2, %v1832_v2 }
 0x312   :  { %887 = vmatpush1.bf16.msra.mxu0 %v1780_v60  ;;  %1642 = vmatpush3.bf16.msra.mxu1 %v1783_v61 }
 0x313   :  { %888 = vmatprep.subr.bf16.mxu0 %v1786_v62  ;;  %1643 = vmatprep.subr.bf16.mxu1 %v1832_v2 }
 0x316   :  { %889 = vmatpush1.bf16.msra.mxu0 %v1784_v63  ;;  %1644 = vmatpush3.bf16.msra.mxu1 %v1787_v0  ;;  %v1808_v63 = vld [vmem:[%s2290_s2 + $0x480] ss:$12 sps:$4 sm:$0xff]   ;;  %v1810_v0 = vld [vmem:[%s2290_s2 + $0x4b0] ss:$12 sps:$4 sm:$0xff]  }
 0x317   :  { %890 = vmatprep.subr.bf16.mxu0 %v1790_v1  ;;  %1645 = vmatprep.subr.bf16.mxu1 %v1832_v2  ;;  %v1811_v1 = vld [vmem:[%s2290_s2 + $0x4c8] ss:$12 sps:$4 sm:$0xff]  }
 0x31a   :  { %891 = vmatpush1.bf16.msra.mxu0 %v1788_v3  ;;  %1646 = vmatpush3.bf16.msra.mxu1 %v1791_v4  ;;  %v1812_v3 = vld [vmem:[%s2290_s2 + $0x4e0] ss:$12 sps:$4 sm:$0xff]   ;;  %v1813_v4 = vld [vmem:[%s2290_s2 + $0x4f8] ss:$12 sps:$4 sm:$0xff]  }
 0x31b   :  { %892 = vmatprep.subr.bf16.mxu0 %v1794_v5  ;;  %1647 = vmatprep.subr.bf16.mxu1 %v1832_v2  ;;  %v1814_v5 = vld [vmem:[%s2290_s2 + $0x510] ss:$12 sps:$4 sm:$0xff]  }
 0x31e   :  { %893 = vmatpush1.bf16.msra.mxu0 %v1792_v6  ;;  %1648 = vmatpush3.bf16.msra.mxu1 %v1795_v9 }
 0x31f   :  { %894 = vmatprep.subr.bf16.mxu0 %v1798_v11  ;;  %1649 = vmatprep.subr.bf16.mxu1 %v1832_v2 }
 0x322   :  { %895 = vmatpush1.bf16.msra.mxu0 %v1796_v12  ;;  %1650 = vmatpush3.bf16.msra.mxu1 %v1799_v13  ;;  %v1815_v12 = vld [vmem:[%s2290_s2 + $0x528] ss:$12 sps:$4 sm:$0xff]   ;;  %v1816_v13 = vld [vmem:[%s2290_s2 + $0x540] ss:$12 sps:$4 sm:$0xff]  }
 0x323   :  { %896 = vmatprep.subr.bf16.mxu0 %v1802_v14  ;;  %1651 = vmatprep.subr.bf16.mxu1 %v1832_v2  ;;  %v1817_v14 = vld [vmem:[%s2290_s2 + $0x558] ss:$12 sps:$4 sm:$0xff]  }
 0x326   :  { %897 = vmatpush1.bf16.msra.mxu0 %v1800_v16  ;;  %1652 = vmatpush3.bf16.msra.mxu1 %v1803_v17  ;;  %v1819_v16 = vld [vmem:[%s2290_s2 + $0x588] ss:$12 sps:$4 sm:$0xff]   ;;  %v1820_v17 = vld [vmem:[%s2290_s2 + $0x5a0] ss:$12 sps:$4 sm:$0xff]  }
 0x327   :  { %898 = vmatprep.subr.bf16.mxu0 %v1806_v19  ;;  %1653 = vmatprep.subr.bf16.mxu1 %v1832_v2 }
 0x32a   :  { %899 = vmatpush1.bf16.msra.mxu0 %v1804_v20  ;;  %1654 = vmatpush3.bf16.msra.mxu1 %v1807_v21 }
 0x32b   :  { %1664 = vmatprep.subr.mxu1 %v1832_v2  ;;  %1659 = vmatprep.subr.mxu0 %v1832_v2 }
 0x32d   :  { %917 = vmatmul.mubr.bf16.vlgmr.msra.gmra.mrb[12].mxu0 %v481_v23  ;;  %1656 = vmatmul.mubr.bf16.vlgmr.msra.gmra.mrb[12].mxu1 %v481_v23  ;;  %v1823_v23 = vld [vmem:[%s2290_s2 + $0x5e8] ss:$12 sps:$4 sm:$0xff]  }
 0x32e   :  { %1661 = vmatprep.mubr.msk.f32.mxu0 %vm1833_vm2, %v1832_v2  ;;  %1666 = vmatprep.mubr.msk.f32.mxu1 %vm1833_vm2, %v1832_v2 }
 0x3e0   :  { %v709_v24 = vpop.f32.mrb[8].mxu0  ;;  %v750_v25 = vpop.f32.mrb[8].mxu1 }
 0x3e1   :  { %v711_v26 = vpop.f32.mrb[9].mxu0  ;;  %v1637_v27 = vpop.f32.mrb[9].mxu1 }
 0x3e2   :  { %v713_v28 = vpop.f32.mrb[10].mxu0  ;;  %v753_v29 = vpop.f32.mrb[10].mxu1 }
 0x3e3   :  { %v714_v30 = vpop.f32.mrb[11].mxu0  ;;  %v1638_v31 = vpop.f32.mrb[11].mxu1 }
 0x400   :  { %v918_v39 = vpop.f32.mrb[12].mxu0  ;;  %v959_v40 = vpop.f32.mrb[12].mxu1 }
 0x401   :  { %v919_v42 = vadd.f32 %v918_v39, %v709_v24  ;;  %v960_v43 = vadd.f32 %v959_v40, %v750_v25  ;;  %v920_v44 = vpop.f32.mrb[13].mxu0  ;;  %v1657_v45 = vpop.f32.mrb[13].mxu1  ;;  %v1160_v24 = vld [vmem:[%s2291_s3 + $0x5] ss:$0 sm:$0xff] }
 0x402   :  { %v921_v46 = vadd.f32 %v920_v44, %v711_v26  ;;  %v922_v47 = vpop.f32.mrb[14].mxu0  ;;  %v962_v48 = vpop.f32.mrb[14].mxu1 }
 0x403   :  { %v985_v7 = vadd.f32 %v979_v38, %v960_v43  ;;  %v923_v50 = vpop.f32.mrb[15].mxu0  ;;  %v1658_v51 = vpop.f32.mrb[15].mxu1  ;;  %v983_v53 = vadd.f32 %v971_v49, %v919_v42 }
 0x404   :  { %v984_v52 = vadd.f32 %v975_v41, %v921_v46 }
 0x405   :  { %1665 = vmatpush3.msra.mxu1 %v985_v7 }
 0x406   :  { %1660 = vmatpush3.xpose.msra.mxu0 %v984_v52  ;;  %1689 = vmatprep.subr.bf16.mxu1 %v1832_v2 }
 0x407   :  { %1669 = vmatprep.subr.bf16.mxu0 %v1832_v2 }
 0x409   :  { %1662 = vmatmul.mubr.f32.vlgmr.msra.gmra.mrb[16].mxu0 %v983_v53 }
 0x40a   :  { %1685 = vmatprep.mubr.msk.bf16.mxu0 %vm1833_vm2, %v1832_v2  ;;  %1670 = vmatpush3.bf16.msra.mxu0 %v1808_v63 }
 0x40b   :  { %1671 = vmatprep.subr.bf16.mxu0 %v1832_v2 }
 0x40e   :  { %1672 = vmatpush3.bf16.msra.mxu0 %v1809_v8 }
 0x40f   :  { %1673 = vmatprep.subr.bf16.mxu0 %v1832_v2 }
 0x412   :  { %1674 = vmatpush3.bf16.msra.mxu0 %v1810_v0 }
 0x413   :  { %1675 = vmatprep.subr.bf16.mxu0 %v1832_v2 }
 0x416   :  { %1676 = vmatpush3.bf16.msra.mxu0 %v1811_v1 }
 0x417   :  { %1677 = vmatprep.subr.bf16.mxu0 %v1832_v2 }
 0x41a   :  { %1678 = vmatpush3.bf16.msra.mxu0 %v1812_v3 }
 0x41b   :  { %1679 = vmatprep.subr.bf16.mxu0 %v1832_v2 }
 0x41e   :  { %1680 = vmatpush3.bf16.msra.mxu0 %v1813_v4 }
 0x41f   :  { %1681 = vmatprep.subr.bf16.mxu0 %v1832_v2 }
 0x422   :  { %1682 = vmatpush3.bf16.msra.mxu0 %v1814_v5 }
 0x423   :  { %1683 = vmatprep.subr.bf16.mxu0 %v1832_v2 }
 0x426   :  { %1684 = vmatpush3.bf16.msra.mxu0 %v1815_v12 }
 0x4dc   :  { %v1052_v54 = vpop.f32.mrb[16].mxu0 }
 0x4dd   :  { %v1057_v55 = vsel %vm1056_vm3, %v1052_v54, -1e+30  ;;  %v1663_v56 = vpop.f32.mrb[17].mxu0 }
 0x4de   :  { %v1059_v57 = vsel %vm1058_vm4, %v1057_v55, -inf }
 0x4df   :  { %1060 = vmax.xlane.f32.xlu0 %v1059_v57 }
 0x56c   :  { %v1061_v58 = vpop.xlane.xlu0 %1060 }
 0x56d   :  { %v1062_v59 = vsub.f32 %v1057_v55, %v1061_v58 }
 0x56f   :  { %v1063_v60 = vmul.f32 1.442695, %v1062_v59 }
 0x571   :  { %1828 = vpow2.f32 %v1063_v60 }
 0x57b   :  { %v1829_v61 = vpop.eup %1828 }
 0x57c   :  { %v1065_v62 = vsel %vm1058_vm4, %v1829_v61, 0.0 }
 0x57d   :  { %1066 = vadd.xlane.f32.xlu1 %v1065_v62 }
 0x60a   :  { %v1067_v6 = vpop.xlane.xlu1 %1066 }
 0x60b   :  { %1830 = vrcp.f32 %v1067_v6 }
 0x615   :  { %v1831_v9 = vpop.eup %1830 }
 0x616   :  { %v1069_v11 = vmul.f32 %v1831_v9, %v1829_v61 }
 0x618   :  { %1667 = vmatmul.mubr.msk.f32.vlgmr.msra.gmra.mrb[16].mxu1 %vm1058_vm4, %v1069_v11 }
 0x619   :  { %1705 = vmatprep.mubr.msk.bf16.mxu1 %vm1833_vm2, %v1832_v2  ;;  %1690 = vmatpush3.bf16.msra.mxu1 %v1816_v13 }
 0x61a   :  { %1691 = vmatprep.subr.bf16.mxu1 %v1832_v2 }
 0x61d   :  { %1692 = vmatpush3.bf16.msra.mxu1 %v1817_v14 }
 0x61e   :  { %1693 = vmatprep.subr.bf16.mxu1 %v1832_v2 }
 0x621   :  { %1694 = vmatpush3.bf16.msra.mxu1 %v1818_v15 }
 0x622   :  { %1695 = vmatprep.subr.bf16.mxu1 %v1832_v2 }
 0x625   :  { %1696 = vmatpush3.bf16.msra.mxu1 %v1819_v16 }
 0x626   :  { %1697 = vmatprep.subr.bf16.mxu1 %v1832_v2 }
 0x629   :  { %1698 = vmatpush3.bf16.msra.mxu1 %v1820_v17 }
 0x62a   :  { %1699 = vmatprep.subr.bf16.mxu1 %v1832_v2 }
 0x62d   :  { %1700 = vmatpush3.bf16.msra.mxu1 %v1821_v18 }
 0x62e   :  { %1701 = vmatprep.subr.bf16.mxu1 %v1832_v2 }
 0x631   :  { %1702 = vmatpush3.bf16.msra.mxu1 %v1822_v22 }
 0x632   :  { %1703 = vmatprep.subr.bf16.mxu1 %v1832_v2  ;;  %v1267_v2 = vld [vmem:[%s2291_s3 + $0x6] ss:$0 sm:$0xff] }
 0x635   :  { %1704 = vmatpush3.bf16.msra.mxu1 %v1823_v23 }
 0x6eb   :  { %v1139_v19 = vpop.f32.mrb[16].mxu1 }
 0x6ec   :  { %v1143_v20 = vpack.c.bf16 %v1139_v19, %v1139_v19  ;;  %v1668_v21 = vpop.f32.mrb[17].mxu1 }
 0x6ee   :  { %1686 = vmatmul.mubr.bf16.vlgmr.msra.gmra.mrb[20].mxu0 %v1143_v20 }
 0x7c1   :  { %v1243_v25 = vpop.f32.mrb[20].mxu0 }
 0x7c2   :  { %v1244_v26 = vadd.f32 %v1243_v25, %v1160_v24  ;;  %v1687_v27 = vpop.f32.mrb[21].mxu0 }
 0x7c3   :  { %v1246_v28 = vpop.f32.mrb[22].mxu0 }
 0x7c4   :  { %v1249_v29 = vmax.f32 %v1244_v26, 0.0  ;;  %v1688_v30 = vpop.f32.mrb[23].mxu0 }
 0x7c6   :  { %v1250_v31 = vpack.c.bf16 %v1249_v29, %v1249_v29 }
 0x7c8   :  { %1706 = vmatmul.mubr.bf16.vlgmr.msra.gmra.mrb[20].mxu1 %v1250_v31 }
 0x89b   :  { %v1350_v32 = vpop.f32.mrb[20].mxu1 }
 0x89c   :  { %v1351_v33 = vadd.f32 %v1350_v32, %v1267_v2  ;;  %v1707_v34 = vpop.f32.mrb[21].mxu1 }
 0x89d   :  { %v1353_v35 = vpop.f32.mrb[22].mxu1 }
 0x89e   :  { %v1356_v37 = vmul.f32 %v1351_v33, %v1946_v36  ;;  %v1708_v38 = vpop.f32.mrb[23].mxu1 }
 0x8a0   :  { %v1357_v39 = vadd.f32 %v1356_v37, %v1888_v10 }
 0x8a2   :  { %1358 = vst [vmem:[%s2292_s4] sm:$0xff] %v1357_v39 }

</bundles_post_ra>
